<compile_context>
chip_gen: v7x
topology: tpu7x:2x2x1
jax: 0.10.0
libtpu: 0.0.40
codegen_flags: <defaults>
</compile_context>

<pallas_src>
import functools

import jax
import jax.numpy as jnp
from jax import lax
from jax.experimental import pallas as pl
from jax.experimental.pallas import tpu as pltpu


def _attention_softmax_kernel(seed_ref, x_ref, o_ref, *, causal, dropout):
    # x_ref / o_ref block: (gh, tq, lk)
    x = x_ref[...].astype(jnp.float32)
    gh, tq, lk = x.shape

    if causal:
        # Small iotas; the select broadcasts over gh (no full-tile int32 temps).
        q0 = pl.program_id(1) * tq
        q_idx = q0 + lax.broadcasted_iota(jnp.int32, (1, tq, 1), 1)
        k_idx = lax.broadcasted_iota(jnp.int32, (1, 1, lk), 2)
        mask = k_idx <= q_idx                                   # (1, tq, lk)
        # Large finite negative (not -inf): exp underflows to exactly 0 and we
        # never do inf arithmetic (k=0 is always allowed, row max stays finite).
        x = jnp.where(mask, x, jnp.float32(-3.0e38))

    m = jnp.max(x, axis=-1, keepdims=True)
    p = jnp.exp(x - m)
    s = jnp.sum(p, axis=-1, keepdims=True)
    inv = pl.reciprocal(s)                    # exact: (gh, tq, 1) only, cheap

    if dropout > 0.0:
        # ---- portable counter-based PRNG (works on Mosaic and interpret) ----
        # Unique per-element counter across the whole launch.
        block_id = pl.program_id(0) * pl.num_programs(1) + pl.program_id(1)
        hi = lax.broadcasted_iota(jnp.int32, (gh, 1, 1), 0)
        qi = lax.broadcasted_iota(jnp.int32, (1, tq, 1), 1)
        ki = lax.broadcasted_iota(jnp.int32, (1, 1, lk), 2)
        local = (hi * tq + qi) * lk + ki                        # (gh, tq, lk)
        ctr = (block_id * (gh * tq * lk) + local).astype(jnp.uint32)
        # murmur3 fmix32 finalizer, seeded by golden-ratio-mixed seed.
        h = ctr + seed_ref[0].astype(jnp.uint32) * jnp.uint32(0x9E3779B9)
        h = h ^ (h >> jnp.uint32(16))
        h = h * jnp.uint32(0x85EBCA6B)
        h = h ^ (h >> jnp.uint32(13))
        h = h * jnp.uint32(0xC2B2AE35)
        h = h ^ (h >> jnp.uint32(16))
        thresh = min(int(round(dropout * 4294967296.0)), 0xFFFFFFFF)
        keep = h >= jnp.uint32(thresh)
        # Fold the 1/(1-p) scale into the per-row reciprocal (vector, not tile).
        inv = inv * jnp.float32(1.0 / (1.0 - dropout))
        y = jnp.where(keep, p * inv, jnp.float32(0.0))
    else:
        y = p * inv

    o_ref[...] = y.astype(o_ref.dtype)


def attention_softmax(x, dropout=0.0, use_causal_mask=False, training=True,
                      seed=12345):
    """Pallas equivalent of mega2_ops.attention_softmax_fwd.

    x: jnp.ndarray of shape (..., Lq, Lk).  Returns same shape & dtype.
    """
    p_drop = float(dropout) if training else 0.0
    orig_shape = x.shape
    lq, lk = int(orig_shape[-2]), int(orig_shape[-1])
    n = 1
    for d in orig_shape[:-2]:
        n *= int(d)

    itemsize = x.dtype.itemsize
    sublane = 8 if itemsize >= 4 else (16 if itemsize == 2 else 32)

    # ---- generation-aware VMEM budget (safe fallback off-TPU / interpret) ----
    try:
        vmem_cap = int(pltpu.get_tpu_info().vmem_capacity_bytes)
    except Exception:
        vmem_cap = 64 * 1024 * 1024
    if vmem_cap >= 96 * 1024 * 1024:          # v5e / v6e: 128 MiB per core
        target_block = 6 * 1024 * 1024        # f32 working-set per block
        vmem_limit = 96 * 1024 * 1024
    else:                                     # v7x: 64 MiB per core
        target_block = 2 * 1024 * 1024
        vmem_limit = 48 * 1024 * 1024

    # ---- layout: collapse rows for the non-causal path (rows independent) ----
    if use_causal_mask:
        n3, lq3 = n, lq
    else:
        n3, lq3 = 1, n * lq
    x3 = x.reshape(n3, lq3, lk)

    # ---- block sizing: lane-dense (full Lk); guarantee a non-degenerate grid
    min_steps = 8
    row_f32 = lk * 4
    total_rows = n3 * lq3
    rows_target = max(1, target_block // row_f32)
    rows_cap = -(-total_rows // min_steps)            # ceil: >= min_steps blocks
    rows_blk = max(1, min(rows_target, rows_cap))

    if rows_blk >= lq3:
        tq = lq3                                      # full row axis (legal)
        gh = max(1, min(n3, rows_blk // lq3))
    else:
        gh = 1
        tq = max(sublane, (rows_blk // sublane) * sublane)
        if tq >= lq3:
            tq = lq3
    grid = (pl.cdiv(n3, gh), pl.cdiv(lq3, tq))

    seed_arr = jnp.asarray([seed], dtype=jnp.int32)
    kernel = functools.partial(
        _attention_softmax_kernel, causal=bool(use_causal_mask), dropout=p_drop
    )

    out3 = pl.pallas_call(
        kernel,
        out_shape=jax.ShapeDtypeStruct((n3, lq3, lk), x.dtype),
        grid_spec=pltpu.PrefetchScalarGridSpec(
            num_scalar_prefetch=1,
            grid=grid,
            in_specs=[pl.BlockSpec((gh, tq, lk), lambda i, j, seed: (i, j, 0))],
            out_specs=pl.BlockSpec((gh, tq, lk), lambda i, j, seed: (i, j, 0)),
        ),
        compiler_params=pltpu.CompilerParams(
            dimension_semantics=("parallel", "parallel"),
            vmem_limit_bytes=vmem_limit,
        ),
    )(seed_arr, x3)

    return out3.reshape(orig_shape)


class AttentionSoftmax:
    """Mirror of the PyTorch module (stateless — no parameters)."""

    def __init__(self, dropout: float = 0.0, use_causal_mask: bool = False,
                 seed: int = 12345):
        self._dropout = dropout
        self._causal = use_causal_mask
        self._seed = seed
        self.training = True

    def __call__(self, x):
        return attention_softmax(x, self._dropout, self._causal,
                                 self.training, self._seed)


def _reference(x, use_causal_mask):
    xf = x.astype(jnp.float32)
    if use_causal_mask:
        lq, lk = x.shape[-2], x.shape[-1]
        mask = jnp.tril(jnp.ones((lq, lk), dtype=bool))
        xf = jnp.where(mask, xf, -jnp.inf)
    return jax.nn.softmax(xf, axis=-1).astype(x.dtype)


if __name__ == "__main__":
    key = jax.random.PRNGKey(0)
    B, H, L = 2, 4, 16
    x = jax.random.normal(key, (B, H, L, L), dtype=jnp.float32)

    # --- non-causal, no dropout ---
    y = AttentionSoftmax(dropout=0.0, use_causal_mask=False)(x)
    jax.block_until_ready(y)
    y_ref = _reference(x, False)
    assert jnp.allclose(y, y_ref, atol=2e-2, rtol=2e-2)
    assert jnp.max(jnp.abs(jnp.sum(y, axis=-1) - 1.0)) < 5e-2

    # --- causal, no dropout ---
    y_c = AttentionSoftmax(dropout=0.0, use_causal_mask=True)(x)
    jax.block_until_ready(y_c)
    y_cref = _reference(x, True)
    assert jnp.allclose(y_c, y_cref, atol=2e-2, rtol=2e-2)
    upper = ~jnp.tril(jnp.ones((L, L), dtype=bool))
    assert float(jnp.max(jnp.where(upper, y_c, 0.0))) <= 1e-6

    # --- dropout smoke test (training) ---
    y_d = AttentionSoftmax(dropout=0.5, use_causal_mask=False)(x)
    jax.block_until_ready(y_d)
    zero_frac = float(jnp.mean((y_d == 0.0).astype(jnp.float32)))
    assert 0.35 < zero_frac < 0.65, zero_frac
    kept = y_d != 0.0
    assert jnp.allclose(jnp.where(kept, y_d, 0.0),
                        jnp.where(kept, 2.0 * y_ref, 0.0),
                        atol=2e-2, rtol=2e-2)

    print("KERNEL_OK")
</pallas_src>

<mosaic_0001>
module attributes {stable_mosaic.version = 11 : i64} {
  func.func @_attention_softmax_kernel(%arg0: i32, %arg1: i32, %arg2: memref<1xi32, #tpu.memory_space<smem>>, %arg3: memref<1x16x16xf32, #tpu.memory_space<vmem>>, %arg4: memref<1x16x16xf32, #tpu.memory_space<vmem>>) attributes {dimension_semantics = [#tpu.dimension_semantics<parallel>, #tpu.dimension_semantics<parallel>], iteration_bounds = array<i64: 1, 8>, scalar_prefetch = 1 : i64, scratch_operands = 0 : i64, tpu.core_type = #tpu.core_type<tc>, window_params = [{transform_indices = @transform_0, window_bounds = array<i64: 1, 16, 16>}, {transform_indices = @transform_1, window_bounds = array<i64: 1, 16, 16>}]} {
    %c0 = arith.constant 0 : index
    %c0_0 = arith.constant 0 : index
    %c0_1 = arith.constant 0 : index
    %0 = vector.load %arg3[%c0, %c0_0, %c0_1] : memref<1x16x16xf32, #tpu.memory_space<vmem>>, vector<1x16x16xf32>
    %cst = arith.constant dense<0xFF800000> : vector<1x16xf32>
    %1 = vector.multi_reduction <maximumf>, %0, %cst [2] : vector<1x16x16xf32> to vector<1x16xf32>
    %2 = vector.shape_cast %1 : vector<1x16xf32> to vector<1x16x1xf32>
    %3 = vector.broadcast %2 : vector<1x16x1xf32> to vector<1x16x16xf32>
    %4 = arith.subf %0, %3 : vector<1x16x16xf32>
    %5 = math.exp %4 : vector<1x16x16xf32>
    %cst_2 = arith.constant dense<0.000000e+00> : vector<1x16xf32>
    %6 = vector.multi_reduction <add>, %5, %cst_2 [2] : vector<1x16x16xf32> to vector<1x16xf32>
    %7 = vector.shape_cast %6 : vector<1x16xf32> to vector<1x16x1xf32>
    %8 = tpu.reciprocal %7 : vector<1x16x1xf32> -> vector<1x16x1xf32>
    %9 = vector.broadcast %8 : vector<1x16x1xf32> to vector<1x16x16xf32>
    %10 = arith.mulf %5, %9 : vector<1x16x16xf32>
    %c0_3 = arith.constant 0 : index
    %c0_4 = arith.constant 0 : index
    %c0_5 = arith.constant 0 : index
    %11 = vector.load %arg4[%c0_3, %c0_4, %c0_5] : memref<1x16x16xf32, #tpu.memory_space<vmem>>, vector<1x16x16xf32>
    tpu.vector_store %arg4[%c0_3, %c0_4, %c0_5], %10 {strides = array<i32>} : memref<1x16x16xf32, #tpu.memory_space<vmem>>, vector<1x16x16xf32>,
    return
  }
  func.func @transform_0(%arg0: i32, %arg1: i32, %arg2: memref<1xi32, #tpu.memory_space<smem>>) -> (i32, i32, i32) {
    %c0_i32 = arith.constant 0 : i32
    %c0_i32_0 = arith.constant 0 : i32
    return %arg0, %arg1, %c0_i32 : i32, i32, i32
  }
  func.func @transform_1(%arg0: i32, %arg1: i32, %arg2: memref<1xi32, #tpu.memory_space<smem>>) -> (i32, i32, i32) {
    %c0_i32 = arith.constant 0 : i32
    %c0_i32_0 = arith.constant 0 : i32
    return %arg0, %arg1, %c0_i32 : i32, i32, i32
  }
}

</mosaic_0001>

<bundles_post_ra>
// kernel: tpu_custom_call.1
= control target key start
LH: loop header
LB: loop body
LE: loop exit
PB: predicated region body
PF: predicated region fallthrough
CT: control target
= control target key end

     0   :  { %s354_s9 = smov 0   ;;  %s356_s10 = smov 0   ;;  %s396_s0 = inlined_call_operand.<no memory space> [shape: s32[1], index: 0, kind: input, shape index: {}]   ;;  %s397_s1 = inlined_call_operand.vmem [shape: f32[1,128,16], index: 1, kind: input, shape index: {}]   ;;  %s398_s2 = inlined_call_operand.vmem [shape: f32[1,128,16], index: 2, kind: output, shape index: {}]  }
   0x1   :  { %s358_s11 = smov 0  }
   0x2 LB: > { %s22_s0 = sadd.s32 1, %s333_s10  ;;  %p276_p0 = scmp.ge.s32.totalorder %s337_s11, 1  ;;  %s337_s11 = sphi %s358_s11, %s13_s11   ;;  %s333_s10 = sphi %s356_s10, %s400_s10   ;;  %s329_s9 = sphi %s354_s9, %s399_s9  }
   0x3   : > { %p23_p1 = scmp.ge.s32.totalorder %s22_s0, 8  ;;  %p110_p2 = scmp.lt.s32.totalorder %s337_s11, 9 }
   0x5   : > { %s402_s0 = smov (%p23_p1, %s22_s0), 0  ;;  %p111_p3 = pnand %p276_p0, %p110_p2 }
   0x6   : > { %s277_s12 = sshll.u32 (!%p111_p3), %s329_s9, 1  ;;  %vm160_vm0 = vcmask (!%p111_p3), 130048  }
   0x7   : > { %114 = sbr.rel (%p111_p3) target bundleno = 337 (0x151), region = 24  ;;  %p141_p4 = scmp.lt.s32.totalorder (!%p111_p3), %s277_s12, 15 }
   0xe   : > { %s404_s12 = smov (!%p141_p4, %s277_s12), 15 }
   0xf   : > { %s278_s13 = sshll.u32 %s404_s12, 3 }
  0x10   : > { %s146_s16 = scalar_lea.vmem %s397_s1, %s278_s13  ;;  %s156_s19 = scalar_lea.vmem %s398_s2, %s278_s13 }
  0x11   : > { %v158_v0 = vld [vmem:[%s146_s16] sm:$0xff]  ;;  %v159_v1 = vld [vmem:[%s146_s16 + $0x8] sm:$0xff] }
  0x12   : > { %v161_v2 = vsel %vm160_vm0, %v158_v0, -inf  ;;  %v164_v3 = vsel %vm160_vm0, %v159_v1, -inf }
  0x13   : > { %162 = vmax.xlane.f32.xlu0 %v161_v2 }
  0x17   : > { %165 = vmax.xlane.f32.xlu0 %v164_v3 }
  0xa0   : > { %v163_v4 = vpop.xlane.xlu0 %162 }
  0xa1   : > { %v167_v5 = vsub.f32 %v158_v0, %v163_v4 }
  0xa3   : > { %v169_v6 = vmul.f32 1.442695, %v167_v5 }
  0xa4   : > { %v166_v7 = vpop.xlane.xlu0 %165 }
  0xa5   : > { %307 = vpow2.f32 %v169_v6  ;;  %v168_v8 = vsub.f32 %v159_v1, %v166_v7 }
  0xa7   : > { %v171_v9 = vmul.f32 1.442695, %v168_v8 }
  0xa9   : > { %309 = vpow2.f32 %v171_v9 }
  0xaf   : > { %v308_v10 = vpop.eup %307 }
  0xb0   : > { %v173_v11 = vsel %vm160_vm0, %v308_v10, 0.0 }
  0xb1   : > { %174 = vadd.xlane.f32.xlu1 %v173_v11 }
  0xb3   : > { %v310_v12 = vpop.eup %309 }
  0xb4   : > { %v176_v13 = vsel %vm160_vm0, %v310_v12, 0.0 }
  0xb5   : > { %177 = vadd.xlane.f32.xlu1 %v176_v13 }
 0x13e   : > { %v175_v14 = vpop.xlane.xlu1 %174 }
 0x13f   : > { %311 = vrcp.f32 %v175_v14 }
 0x142   : > { %v178_v15 = vpop.xlane.xlu1 %177 }
 0x143   : > { %313 = vrcp.f32 %v178_v15 }
 0x149   : > { %v312_v16 = vpop.eup %311 }
 0x14a   : > { %v181_v17 = vmul.f32 %v312_v16, %v308_v10 }
 0x14c   : > { %183 = vst.msk [vmem:[%s156_s19] sm:$0xff] %vm160_vm0, %v181_v17 }
 0x14d   : > { %v314_v18 = vpop.eup %313 }
 0x14e   : > { %v182_v19 = vmul.f32 %v314_v18, %v310_v12 }
 0x150   : > { %184 = vst.msk [vmem:[%s156_s19 + $0x8] sm:$0xff] %vm160_vm0, %v182_v19 }
 0x151 PF: > { %s13_s11 = sadd.s32 1, %s337_s11   ;;  %s399_s9 = smov %s333_s10 }
 0x152   : > { %p10_p5 = scmp.ge.s32.totalorder %s13_s11, 10   ;;  %s400_s10 = smov %s402_s0 }
 0x154   :  { %12 = sbr.rel (!%p10_p5) target bundleno = 2 (0x2), region = 54 }

</bundles_post_ra>
